<compile_context>
chip_gen: v7x
topology: tpu7x:2x2x1
jax: 0.10.0
libtpu: 0.0.40
codegen_flags: <defaults>
</compile_context>

<pallas_src>
import jax
import jax.numpy as jnp
from jax.experimental import pallas as pl
from jax.experimental.pallas import tpu as pltpu


# Rows per grid step.  Per-step VMEM (f32, (8,128)-tile padded, double
# buffered): 2 * (TN/8 + TN/8) * 4 KiB = TN * 2 KiB -> 4 MiB at TN=2048.
_MAX_ROWS_PER_BLOCK = 2048


def lr_kernel(w_ref, b_ref, x_ref, o_ref):
    # w_ref: SMEM (1, 2) f32   -> [w0, w1]
    # b_ref: SMEM (1,)  f32    -> [b]
    # x_ref: VMEM (TN, 2)      -> row-major input block
    # o_ref: VMEM (TN, 1) f32  -> sigmoid(x @ w.T + b)
    w0 = w_ref[0, 0]
    w1 = w_ref[0, 1]
    b = b_ref[0]

    x = x_ref[...].astype(jnp.float32)   # f32 math even if fed bf16 (v5e-safe)
    x0 = x[:, 0:1]                       # (TN, 1)
    x1 = x[:, 1:2]                       # (TN, 1)
    z = x0 * w0 + x1 * w1 + b            # two VPU FMAs + scalar broadcast, no MXU

    # sigmoid(z) = 1 / (1 + exp(-z)); exp and reciprocal both run on the EUP
    # slot, leaving VALU / load-store slots free.  Saturates cleanly for
    # large |z| (exp -> inf gives 0, exp -> 0 gives 1).
    p = pl.reciprocal(1.0 + jnp.exp(-z))
    o_ref[...] = p.astype(o_ref.dtype)


def lr_forward(x, weight, bias):
    """x: (N, 2), weight: (1, 2), bias: (1,) -> (N, 1) f32.

    Matches nn.Linear(2, 1) followed by nn.Sigmoid, with no wrapper-side
    relayout of x or of the output.
    """
    n, k = x.shape
    assert k == 2 and weight.shape == (1, 2) and bias.shape == (1,)

    # Single block when the whole problem fits comfortably; otherwise tile the
    # row axis (8-aligned blocks, ragged tail handled by Pallas).
    tn = n if n <= _MAX_ROWS_PER_BLOCK else _MAX_ROWS_PER_BLOCK
    grid = (pl.cdiv(n, tn),)

    return pl.pallas_call(
        lr_kernel,
        out_shape=jax.ShapeDtypeStruct((n, 1), jnp.float32),
        grid=grid,
        in_specs=[
            # Tiny parameters live in SMEM and are read as scalars.
            pl.BlockSpec(memory_space=pltpu.MemorySpace.SMEM),   # weight (1, 2)
            pl.BlockSpec(memory_space=pltpu.MemorySpace.SMEM),   # bias   (1,)
            pl.BlockSpec((tn, 2), lambda i: (i, 0)),             # x rows
        ],
        out_specs=pl.BlockSpec((tn, 1), lambda i: (i, 0)),
        compiler_params=pltpu.CompilerParams(
            dimension_semantics=("parallel",),   # shard rows across TCs (v7x)
        ),
    )(weight.astype(jnp.float32), bias.astype(jnp.float32), x)


def reference_forward(x, weight, bias):
    z = x.astype(jnp.float32) @ weight.T + bias[None, :]
    return jax.nn.sigmoid(z)


if __name__ == "__main__":
    key = jax.random.PRNGKey(0)
    k_x0, k_x1, k_w, k_b = jax.random.split(key, 4)

    # Mirror the PyTorch script's data construction (bias=-1, mean=1.7,
    # 100 samples per class, 2 features each -> x: (200, 2)).
    sample_num = 100
    mean_value = 1.7
    data_bias = -1.0
    x0 = mean_value + jax.random.normal(k_x0, (sample_num, 2), jnp.float32) + data_bias
    x1 = -mean_value + jax.random.normal(k_x1, (sample_num, 2), jnp.float32) + data_bias
    x = jnp.concatenate([x0, x1], axis=0)  # (200, 2)

    # nn.Linear(2, 1)-shaped params, uniform(-1/sqrt(2), 1/sqrt(2)) like the
    # PyTorch default init.
    bound = 1.0 / float(jnp.sqrt(2.0))
    weight = jax.random.uniform(k_w, (1, 2), jnp.float32, -bound, bound)
    b = jax.random.uniform(k_b, (1,), jnp.float32, -bound, bound)

    out = jax.block_until_ready(lr_forward(x, weight, b))

    ref = reference_forward(x, weight, b)
    assert out.shape == (200, 1), out.shape
    max_err = float(jnp.max(jnp.abs(out - ref)))
    assert max_err < 1e-5, max_err

    print("KERNEL_OK")
</pallas_src>

<mosaic_0001>
module attributes {stable_mosaic.version = 11 : i64} {
  func.func @lr_kernel(%arg0: i32, %arg1: memref<1x2xf32, #tpu.memory_space<smem>>, %arg2: memref<1xf32, #tpu.memory_space<smem>>, %arg3: memref<200x2xf32, #tpu.memory_space<vmem>>, %arg4: memref<200x1xf32, #tpu.memory_space<vmem>>) attributes {dimension_semantics = [#tpu.dimension_semantics<parallel>], iteration_bounds = array<i64: 1>, scalar_prefetch = 0 : i64, scratch_operands = 0 : i64, tpu.core_type = #tpu.core_type<tc>, window_params = [{transform_indices = @transform_0, window_bounds = array<i64: 1, 2>}, {transform_indices = @transform_1, window_bounds = array<i64: 1>}, {transform_indices = @transform_2, window_bounds = array<i64: 200, 2>}, {transform_indices = @transform_3, window_bounds = array<i64: 200, 1>}]} {
    %c0 = arith.constant 0 : index
    %c0_0 = arith.constant 0 : index
    %0 = memref.load %arg1[%c0, %c0_0] : memref<1x2xf32, #tpu.memory_space<smem>>
    %c0_1 = arith.constant 0 : index
    %c1 = arith.constant 1 : index
    %1 = memref.load %arg1[%c0_1, %c1] : memref<1x2xf32, #tpu.memory_space<smem>>
    %c0_2 = arith.constant 0 : index
    %2 = memref.load %arg2[%c0_2] : memref<1xf32, #tpu.memory_space<smem>>
    %c0_3 = arith.constant 0 : index
    %c0_4 = arith.constant 0 : index
    %3 = vector.load %arg3[%c0_3, %c0_4] : memref<200x2xf32, #tpu.memory_space<vmem>>, vector<200x2xf32>
    %4 = vector.extract_strided_slice %3 {offsets = [0, 0], sizes = [200, 1], strides = [1, 1]} : vector<200x2xf32> to vector<200x1xf32>
    %5 = vector.extract_strided_slice %3 {offsets = [0, 1], sizes = [200, 1], strides = [1, 1]} : vector<200x2xf32> to vector<200x1xf32>
    %6 = vector.broadcast %0 : f32 to vector<200x1xf32>
    %7 = arith.mulf %4, %6 : vector<200x1xf32>
    %8 = vector.broadcast %1 : f32 to vector<200x1xf32>
    %9 = arith.mulf %5, %8 : vector<200x1xf32>
    %10 = arith.addf %7, %9 : vector<200x1xf32>
    %11 = vector.broadcast %2 : f32 to vector<200x1xf32>
    %12 = arith.addf %10, %11 : vector<200x1xf32>
    %cst = arith.constant 0.000000e+00 : f32
    %13 = vector.broadcast %cst : f32 to vector<200x1xf32>
    %14 = arith.subf %13, %12 : vector<200x1xf32>
    %15 = math.exp %14 : vector<200x1xf32>
    %cst_5 = arith.constant 1.000000e+00 : f32
    %16 = vector.broadcast %cst_5 : f32 to vector<200x1xf32>
    %17 = arith.addf %16, %15 : vector<200x1xf32>
    %18 = tpu.reciprocal %17 : vector<200x1xf32> -> vector<200x1xf32>
    %c0_6 = arith.constant 0 : index
    %c0_7 = arith.constant 0 : index
    %19 = vector.load %arg4[%c0_6, %c0_7] : memref<200x1xf32, #tpu.memory_space<vmem>>, vector<200x1xf32>
    tpu.vector_store %arg4[%c0_6, %c0_7], %18 {strides = array<i32>} : memref<200x1xf32, #tpu.memory_space<vmem>>, vector<200x1xf32>,
    return
  }
  func.func @transform_0(%arg0: i32) -> (i32, i32) {
    %c0_i32 = arith.constant 0 : i32
    %c0_i32_0 = arith.constant 0 : i32
    %c0_i32_1 = arith.constant 0 : i32
    return %c0_i32, %c0_i32_0 : i32, i32
  }
  func.func @transform_1(%arg0: i32) -> i32 {
    %c0_i32 = arith.constant 0 : i32
    %c0_i32_0 = arith.constant 0 : i32
    return %c0_i32 : i32
  }
  func.func @transform_2(%arg0: i32) -> (i32, i32) {
    %c0_i32 = arith.constant 0 : i32
    %c0_i32_0 = arith.constant 0 : i32
    return %arg0, %c0_i32 : i32, i32
  }
  func.func @transform_3(%arg0: i32) -> (i32, i32) {
    %c0_i32 = arith.constant 0 : i32
    %c0_i32_0 = arith.constant 0 : i32
    return %arg0, %c0_i32 : i32, i32
  }
}

</mosaic_0001>

<bundles_post_ra>
// kernel: tpu_custom_call.1
= control target key start
LH: loop header
LB: loop body
LE: loop exit
PB: predicated region body
PF: predicated region fallthrough
CT: control target
= control target key end

     0   :  { %9 = vsyncpa [#allocation4], 0  ;;  %s941_s0 = inlined_call_operand.vmem [shape: f32[1,2], index: 0, kind: input, shape index: {}]   ;;  %s942_s1 = inlined_call_operand.<no memory space> [shape: f32[1], index: 1, kind: input, shape index: {}]   ;;  %s943_s2 = inlined_call_operand.vmem [shape: f32[200,2], index: 2, kind: input, shape index: {}]   ;;  %s944_s3 = inlined_call_operand.vmem [shape: f32[200,1], index: 3, kind: output, shape index: {}]  }
   0x1   :  { %s16_s14 = sshll.u32 %s941_s0, 4  ;;  %s17_s14 = int_to_ptr.vmem [resolvable:$true] %s16_s14 }
   0x2   :  { %s518_s15 = scalar_lea.vmem %s17_s14, 16  ;;  %p523_p1 = scmp.lt.s32.totalorder %s17_s14, %s17_s14 }
   0x3   :  { %p519_p0 = scmp.ne.s32.totalorder %s17_s14, %s518_s15  ;;  %p524_p2 = scmp.lt.s32.totalorder %s518_s15, %s518_s15 }
   0x5   :  { %p525_p3 = por %p524_p2, %p523_p1 }
   0x7   :  { %p526_p4 = pnand %p525_p3, %p519_p0 }
   0x9   :  { %529 = shalt.err (!%p526_p4)
}
   0xa   :  { %s532_s16 = smov [#allocation3]  }
   0xb   :  { %19 = dma.vmem_to_smem %s17_s14, 16, %s532_s16, [#allocation4]  }
   0xc   :  { %530 = dma.done.wait [#allocation4], 16  }
   0xd   :  { %531 = vsyncadd [#allocation4], 4294967280 }
   0xe   :  { %27 = sfence }
   0xf   :  { %s415_s17 = sld [smem:[#allocation3 + $0x1]]  ;;  %v560_v0 = vld [vmem:[%s943_s2] sm:$0xff]  ;;  %v565_v1 = vld [vmem:[%s943_s2 + $0x10] sm:$0xff]  ;;  %v572_v3 = vld [vmem:[%s943_s2 + $0x8] sm:$0xff]  ;;  %s533_s25 = smov 127   ;;  %v768_v54 = vstv %s942_s1  ;;  %vm384_vm0 = vcmask 7168  }
  0x10   :  { %v577_v4 = vld [vmem:[%s943_s2 + $0x18] sm:$0xff]  ;;  %v592_v9 = vld [vmem:[%s943_s2 + $0x20] sm:$0xff]  ;;  %v597_v10 = vld [vmem:[%s943_s2 + $0x28] sm:$0xff]  ;;  %s28_s14 = sld [smem:[#allocation3]] }
  0x11   :  { %v608_v13 = vld [vmem:[%s943_s2 + $0x30] sm:$0xff]  ;;  %v613_v14 = vld [vmem:[%s943_s2 + $0x38] sm:$0xff]  ;;  %v624_v17 = vld [vmem:[%s943_s2 + $0x40] sm:$0xff] }
  0x12   :  { %v629_v18 = vld [vmem:[%s943_s2 + $0x48] sm:$0xff]  ;;  %v640_v21 = vld [vmem:[%s943_s2 + $0x50] sm:$0xff]  ;;  %v645_v22 = vld [vmem:[%s943_s2 + $0x58] sm:$0xff] }
  0x13   :  { %v656_v25 = vld [vmem:[%s943_s2 + $0x60] sm:$0xff]  ;;  %v661_v26 = vld [vmem:[%s943_s2 + $0x68] sm:$0xff]  ;;  %v672_v29 = vld [vmem:[%s943_s2 + $0x70] sm:$0xff] }
  0x14   :  { %v677_v30 = vld [vmem:[%s943_s2 + $0x78] sm:$0xff]  ;;  %v688_v33 = vld [vmem:[%s943_s2 + $0x80] sm:$0xff]  ;;  %v693_v34 = vld [vmem:[%s943_s2 + $0x88] sm:$0xff] }
  0x15   :  { %v567_v2 = vstv %s415_s17  ;;  %v704_v37 = vld [vmem:[%s943_s2 + $0x90] sm:$0xff]  ;;  %v709_v38 = vld [vmem:[%s943_s2 + $0x98] sm:$0xff]  ;;  %v720_v41 = vld [vmem:[%s943_s2 + $0xa0] sm:$0xff] }
  0x16   :  { %v83_v5 = vmul.f32 %v567_v2, %v560_v0  ;;  %v85_v6 = vmul.f32 %v567_v2, %v565_v1  ;;  %v84_v7 = vmul.f32 %v567_v2, %v572_v3  ;;  %v86_v8 = vmul.f32 %v567_v2, %v577_v4  ;;  %v725_v42 = vld [vmem:[%s943_s2 + $0xa8] sm:$0xff]  ;;  %v736_v45 = vld [vmem:[%s943_s2 + $0xb0] sm:$0xff]  ;;  %v741_v46 = vld [vmem:[%s943_s2 + $0xb8] sm:$0xff] }
  0x17   :  { %v87_v11 = vmul.f32 %v567_v2, %v592_v9  ;;  %v88_v12 = vmul.f32 %v567_v2, %v597_v10  ;;  %v89_v15 = vmul.f32 %v567_v2, %v608_v13  ;;  %v90_v16 = vmul.f32 %v567_v2, %v613_v14  ;;  %v752_v49 = vld [vmem:[%s943_s2 + $0xc0] sm:$0xff] }
  0x18   :  { %133 = vrot.lane.b32.xlu0 %v83_v5, %s533_s25  ;;  %137 = vrot.lane.b32.xlu1 %v85_v6, %s533_s25  ;;  %v91_v19 = vmul.f32 %v567_v2, %v624_v17  ;;  %v92_v20 = vmul.f32 %v567_v2, %v629_v18  ;;  %v93_v23 = vmul.f32 %v567_v2, %v640_v21  ;;  %v759_v51 = vstv %s28_s14 }
  0x19   :  { %v94_v24 = vmul.f32 %v567_v2, %v645_v22  ;;  %v95_v27 = vmul.f32 %v567_v2, %v656_v25  ;;  %v96_v28 = vmul.f32 %v567_v2, %v661_v26  ;;  %v97_v31 = vmul.f32 %v567_v2, %v672_v29 }
  0x1a   :  { %v98_v32 = vmul.f32 %v567_v2, %v677_v30  ;;  %v99_v35 = vmul.f32 %v567_v2, %v688_v33  ;;  %v100_v36 = vmul.f32 %v567_v2, %v693_v34  ;;  %v101_v39 = vmul.f32 %v567_v2, %v704_v37 }
  0x1b   :  { %v102_v40 = vmul.f32 %v567_v2, %v709_v38  ;;  %v103_v43 = vmul.f32 %v567_v2, %v720_v41  ;;  %v104_v44 = vmul.f32 %v567_v2, %v725_v42  ;;  %v105_v47 = vmul.f32 %v567_v2, %v736_v45 }
  0x1c   :  { %135 = vrot.lane.b32.xlu0 %v84_v7, %s533_s25  ;;  %139 = vrot.lane.b32.xlu1 %v86_v8, %s533_s25  ;;  %v106_v48 = vmul.f32 %v567_v2, %v741_v46  ;;  %v107_v50 = vmul.f32 %v567_v2, %v752_v49  ;;  %v57_v52 = vmul.f32 %v759_v51, %v560_v0 }
  0x1d   :  { %v59_v53 = vmul.f32 %v759_v51, %v565_v1  ;;  %v58_v59 = vmul.f32 %v759_v51, %v572_v3  ;;  %v60_v60 = vmul.f32 %v759_v51, %v577_v4  ;;  %v61_v1 = vmul.f32 %v759_v51, %v592_v9 }
  0x1e   :  { %v62_v8 = vmul.f32 %v759_v51, %v597_v10  ;;  %v64_v9 = vmul.f32 %v759_v51, %v613_v14 }
  0x20   :  { %141 = vrot.lane.b32.xlu0 %v87_v11, %s533_s25  ;;  %143 = vrot.lane.b32.xlu1 %v88_v12, %s533_s25 }
  0x24   :  { %145 = vrot.lane.b32.xlu0 %v89_v15, %s533_s25  ;;  %147 = vrot.lane.b32.xlu1 %v90_v16, %s533_s25 }
  0x28   :  { %149 = vrot.lane.b32.xlu0 %v91_v19, %s533_s25  ;;  %151 = vrot.lane.b32.xlu1 %v92_v20, %s533_s25  ;;  %v63_v19 = vmul.f32 %v759_v51, %v608_v13  ;;  %v65_v13 = vmul.f32 %v759_v51, %v624_v17  ;;  %v67_v17 = vmul.f32 %v759_v51, %v640_v21 }
  0x2c   :  { %153 = vrot.lane.b32.xlu0 %v93_v23, %s533_s25  ;;  %155 = vrot.lane.b32.xlu1 %v94_v24, %s533_s25 }
  0x30   :  { %157 = vrot.lane.b32.xlu0 %v95_v27, %s533_s25  ;;  %159 = vrot.lane.b32.xlu1 %v96_v28, %s533_s25 }
  0x34   :  { %161 = vrot.lane.b32.xlu0 %v97_v31, %s533_s25  ;;  %163 = vrot.lane.b32.xlu1 %v98_v32, %s533_s25 }
  0x38   :  { %165 = vrot.lane.b32.xlu0 %v99_v35, %s533_s25  ;;  %167 = vrot.lane.b32.xlu1 %v100_v36, %s533_s25 }
  0x3c   :  { %169 = vrot.lane.b32.xlu0 %v101_v39, %s533_s25  ;;  %171 = vrot.lane.b32.xlu1 %v102_v40, %s533_s25 }
  0x40   :  { %173 = vrot.lane.b32.xlu0 %v103_v43, %s533_s25  ;;  %175 = vrot.lane.b32.xlu1 %v104_v44, %s533_s25  ;;  %v66_v44 = vmul.f32 %v759_v51, %v629_v18  ;;  %v68_v18 = vmul.f32 %v759_v51, %v645_v22 }
  0x44   :  { %177 = vrot.lane.b32.xlu0 %v105_v47, %s533_s25  ;;  %179 = vrot.lane.b32.xlu1 %v106_v48, %s533_s25 }
  0x48   :  { %181 = vrot.lane.b32.xlu0 %v107_v50, %s533_s25 }
  0x8a   :  { %v134_v55 = vpop.permute.xlu0 %133  ;;  %v138_v56 = vpop.permute.xlu1 %137 }
  0x8b   :  { %v208_v57 = vadd.f32 %v134_v55, %v57_v52  ;;  %v210_v58 = vadd.f32 %v138_v56, %v59_v53 }
  0x8d   :  { %v234_v61 = vadd.f32 %v768_v54, %v208_v57  ;;  %v236_v62 = vadd.f32 %v768_v54, %v210_v58 }
  0x8e   :  { %v136_v63 = vpop.permute.xlu0 %135  ;;  %v140_v0 = vpop.permute.xlu1 %139 }
  0x8f   :  { %v259_v2 = vsub.f32 0.0, %v234_v61  ;;  %v261_v5 = vsub.f32 0.0, %v236_v62  ;;  %v209_v6 = vadd.f32 %v136_v63, %v58_v59  ;;  %v211_v7 = vadd.f32 %v140_v0, %v60_v60 }
  0x90   :  { %v69_v63 = vmul.f32 %v759_v51, %v656_v25  ;;  %v71_v25 = vmul.f32 %v759_v51, %v672_v29 }
  0x91   :  { %v284_v3 = vmul.f32 1.442695, %v259_v2  ;;  %v288_v11 = vmul.f32 1.442695, %v261_v5  ;;  %v235_v4 = vadd.f32 %v768_v54, %v209_v6  ;;  %v237_v12 = vadd.f32 %v768_v54, %v211_v7 }
  0x92   :  { %v142_v15 = vpop.permute.xlu0 %141  ;;  %v144_v16 = vpop.permute.xlu1 %143  ;;  %v70_v7 = vmul.f32 %v759_v51, %v661_v26 }
  0x93   :  { %418 = vpow2.f32 %v284_v3  ;;  %v260_v20 = vsub.f32 0.0, %v235_v4  ;;  %v262_v23 = vsub.f32 0.0, %v237_v12  ;;  %v212_v24 = vadd.f32 %v142_v15, %v61_v1 }
  0x94   :  { %420 = vpow2.f32 %v288_v11  ;;  %v213_v10 = vadd.f32 %v144_v16, %v62_v8 }
  0x95   :  { %v286_v27 = vmul.f32 1.442695, %v260_v20  ;;  %v290_v28 = vmul.f32 1.442695, %v262_v23  ;;  %v238_v31 = vadd.f32 %v768_v54, %v212_v24 }
  0x96   :  { %v239_v32 = vadd.f32 %v768_v54, %v213_v10  ;;  %v146_v35 = vpop.permute.xlu0 %145  ;;  %v148_v36 = vpop.permute.xlu1 %147 }
  0x97   :  { %422 = vpow2.f32 %v286_v27  ;;  %v263_v39 = vsub.f32 0.0, %v238_v31  ;;  %v214_v14 = vadd.f32 %v146_v35, %v63_v19  ;;  %v215_v40 = vadd.f32 %v148_v36, %v64_v9 }
  0x98   :  { %424 = vpow2.f32 %v290_v28  ;;  %v264_v43 = vsub.f32 0.0, %v239_v32  ;;  %v72_v19 = vmul.f32 %v759_v51, %v677_v30  ;;  %v73_v35 = vmul.f32 %v759_v51, %v688_v33 }
  0x99   :  { %v292_v47 = vmul.f32 1.442695, %v263_v39  ;;  %v240_v48 = vadd.f32 %v768_v54, %v214_v14  ;;  %v241_v50 = vadd.f32 %v768_v54, %v215_v40  ;;  %v74_v39 = vmul.f32 %v759_v51, %v693_v34 }
  0x9a   :  { %v294_v52 = vmul.f32 1.442695, %v264_v43  ;;  %v150_v53 = vpop.permute.xlu0 %149  ;;  %v152_v55 = vpop.permute.xlu1 %151 }
  0x9b   :  { %426 = vpow2.f32 %v292_v47  ;;  %v265_v56 = vsub.f32 0.0, %v240_v48  ;;  %v266_v57 = vsub.f32 0.0, %v241_v50  ;;  %v216_v58 = vadd.f32 %v150_v53, %v65_v13 }
  0x9c   :  { %428 = vpow2.f32 %v294_v52  ;;  %v217_v59 = vadd.f32 %v152_v55, %v66_v44 }
  0x9d   :  { %v419_v60 = vpop.eup %418  ;;  %v296_v61 = vmul.f32 1.442695, %v265_v56  ;;  %v242_v62 = vadd.f32 %v768_v54, %v216_v58  ;;  %v298_v2 = vmul.f32 1.442695, %v266_v57  ;;  %v76_v58 = vmul.f32 %v759_v51, %v709_v38 }
  0x9e   :  { %v421_v0 = vpop.eup %420  ;;  %v334_v1 = vadd.f32 1.0, %v419_v60  ;;  %v243_v21 = vadd.f32 %v768_v54, %v217_v59  ;;  %v154_v5 = vpop.permute.xlu0 %153 }
  0x9f   :  { %v156_v6 = vpop.permute.xlu1 %155  ;;  %v336_v8 = vadd.f32 1.0, %v421_v0  ;;  %430 = vpow2.f32 %v296_v61  ;;  %v267_v22 = vsub.f32 0.0, %v242_v62  ;;  %v218_v3 = vadd.f32 %v154_v5, %v67_v17 }
  0xa0   :  { %432 = vrcp.f32 %v334_v1  ;;  %v268_v11 = vsub.f32 0.0, %v243_v21  ;;  %v219_v4 = vadd.f32 %v156_v6, %v68_v18  ;;  %v75_v17 = vmul.f32 %v759_v51, %v704_v37 }
  0xa1   :  { %v423_v12 = vpop.eup %422  ;;  %434 = vrcp.f32 %v336_v8  ;;  %v300_v15 = vmul.f32 1.442695, %v267_v22  ;;  %v244_v16 = vadd.f32 %v768_v54, %v218_v3  ;;  %v77_v5 = vmul.f32 %v759_v51, %v720_v41 }
  0xa2   :  { %v425_v26 = vpop.eup %424  ;;  %v335_v9 = vadd.f32 1.0, %v423_v12  ;;  %436 = vpow2.f32 %v298_v2  ;;  %v302_v20 = vmul.f32 1.442695, %v268_v11  ;;  %v245_v23 = vadd.f32 %v768_v54, %v219_v4  ;;  %v158_v24 = vpop.permute.xlu0 %157 }
  0xa3   :  { %v160_v10 = vpop.permute.xlu1 %159  ;;  %v337_v27 = vadd.f32 1.0, %v425_v26  ;;  %438 = vpow2.f32 %v300_v15  ;;  %v269_v28 = vsub.f32 0.0, %v244_v16  ;;  %v220_v29 = vadd.f32 %v158_v24, %v69_v63 }
  0xa4   :  { %440 = vrcp.f32 %v335_v9  ;;  %v270_v31 = vsub.f32 0.0, %v245_v23  ;;  %v221_v32 = vadd.f32 %v160_v10, %v70_v7  ;;  %v78_v16 = vmul.f32 %v759_v51, %v725_v42 }
  0xa5   :  { %v427_v36 = vpop.eup %426  ;;  %442 = vrcp.f32 %v337_v27  ;;  %v304_v30 = vmul.f32 1.442695, %v269_v28  ;;  %v246_v13 = vadd.f32 %v768_v54, %v220_v29  ;;  %v79_v42 = vmul.f32 %v759_v51, %v736_v45 }
  0xa6   :  { %v429_v14 = vpop.eup %428  ;;  %v338_v40 = vadd.f32 1.0, %v427_v36  ;;  %444 = vpow2.f32 %v302_v20  ;;  %v306_v43 = vmul.f32 1.442695, %v270_v31  ;;  %v247_v44 = vadd.f32 %v768_v54, %v221_v32  ;;  %v162_v47 = vpop.permute.xlu0 %161 }
  0xa7   :  { %v164_v48 = vpop.permute.xlu1 %163  ;;  %v339_v50 = vadd.f32 1.0, %v429_v14  ;;  %446 = vpow2.f32 %v304_v30  ;;  %v271_v52 = vsub.f32 0.0, %v246_v13  ;;  %v222_v33 = vadd.f32 %v162_v47, %v71_v25 }
  0xa8   :  { %448 = vrcp.f32 %v338_v40  ;;  %v272_v53 = vsub.f32 0.0, %v247_v44  ;;  %v223_v55 = vadd.f32 %v164_v48, %v72_v19  ;;  %v80_v24 = vmul.f32 %v759_v51, %v741_v46 }
  0xa9   :  { %v431_v56 = vpop.eup %430  ;;  %450 = vrcp.f32 %v339_v50  ;;  %v308_v34 = vmul.f32 1.442695, %v271_v52  ;;  %v248_v57 = vadd.f32 %v768_v54, %v222_v33  ;;  %v81_v44 = vmul.f32 %v759_v51, %v752_v49 }
  0xaa   :  { %v433_v59 = vpop.eup %432  ;;  %v340_v18 = vadd.f32 1.0, %v431_v56  ;;  %452 = vpow2.f32 %v306_v43  ;;  %v310_v60 = vmul.f32 1.442695, %v272_v53  ;;  %v249_v61 = vadd.f32 %v768_v54, %v223_v55  ;;  %v166_v62 = vpop.permute.xlu0 %165 }
  0xab   :  { %v168_v63 = vpop.permute.xlu1 %167  ;;  %v435_v0 = vpop.eup %434  ;;  %385 = vst.msk [vmem:[%s944_s3] sm:$0xff] %vm384_vm0, %v433_v59  ;;  %454 = vpow2.f32 %v308_v34  ;;  %v273_v37 = vsub.f32 0.0, %v248_v57  ;;  %v224_v1 = vadd.f32 %v166_v62, %v73_v35 }
  0xac   :  { %v225_v2 = vadd.f32 %v168_v63, %v74_v39  ;;  %v437_v21 = vpop.eup %436  ;;  %387 = vst.msk [vmem:[%s944_s3 + $0x10] sm:$0xff] %vm384_vm0, %v435_v0  ;;  %456 = vrcp.f32 %v340_v18  ;;  %v274_v38 = vsub.f32 0.0, %v249_v61 }
  0xad   :  { %v439_v6 = vpop.eup %438  ;;  %v341_v7 = vadd.f32 1.0, %v437_v21  ;;  %458 = vpow2.f32 %v310_v60  ;;  %v312_v8 = vmul.f32 1.442695, %v273_v37  ;;  %v250_v22 = vadd.f32 %v768_v54, %v224_v1 }
  0xae   :  { %v441_v3 = vpop.eup %440  ;;  %v342_v11 = vadd.f32 1.0, %v439_v6  ;;  %v314_v4 = vmul.f32 1.442695, %v274_v38  ;;  %v251_v25 = vadd.f32 %v768_v54, %v225_v2  ;;  %v170_v12 = vpop.permute.xlu0 %169 }
  0xaf   :  { %v172_v15 = vpop.permute.xlu1 %171  ;;  %v443_v19 = vpop.eup %442  ;;  %386 = vst.msk [vmem:[%s944_s3 + $0x8] sm:$0xff] %vm384_vm0, %v441_v3  ;;  %460 = vrcp.f32 %v341_v7  ;;  %v275_v41 = vsub.f32 0.0, %v250_v22  ;;  %v226_v26 = vadd.f32 %v170_v12, %v75_v17 }
  0xb0   :  { %v227_v9 = vadd.f32 %v172_v15, %v76_v58  ;;  %v445_v20 = vpop.eup %444  ;;  %388 = vst.msk [vmem:[%s944_s3 + $0x18] sm:$0xff] %vm384_vm0, %v443_v19  ;;  %462 = vrcp.f32 %v342_v11  ;;  %v276_v23 = vsub.f32 0.0, %v251_v25 }
  0xb1   :  { %v447_v10 = vpop.eup %446  ;;  %v343_v27 = vadd.f32 1.0, %v445_v20  ;;  %464 = vpow2.f32 %v312_v8  ;;  %v316_v28 = vmul.f32 1.442695, %v275_v41  ;;  %v252_v29 = vadd.f32 %v768_v54, %v226_v26 }
  0xb2   :  { %v449_v31 = vpop.eup %448  ;;  %v344_v32 = vadd.f32 1.0, %v447_v10  ;;  %466 = vpow2.f32 %v314_v4  ;;  %v318_v35 = vmul.f32 1.442695, %v276_v23  ;;  %v253_v36 = vadd.f32 %v768_v54, %v227_v9  ;;  %v174_v30 = vpop.permute.xlu0 %173 }
  0xb3   :  { %v176_v13 = vpop.permute.xlu1 %175  ;;  %v451_v39 = vpop.eup %450  ;;  %389 = vst.msk [vmem:[%s944_s3 + $0x20] sm:$0xff] %vm384_vm0, %v449_v31  ;;  %468 = vrcp.f32 %v343_v27  ;;  %v277_v45 = vsub.f32 0.0, %v252_v29  ;;  %v228_v46 = vadd.f32 %v174_v30, %v77_v5 }
  0xb4   :  { %v229_v14 = vadd.f32 %v176_v13, %v78_v16  ;;  %v453_v40 = vpop.eup %452  ;;  %390 = vst.msk [vmem:[%s944_s3 + $0x28] sm:$0xff] %vm384_vm0, %v451_v39  ;;  %470 = vrcp.f32 %v344_v32  ;;  %v278_v43 = vsub.f32 0.0, %v253_v36 }
  0xb5   :  { %v455_v47 = vpop.eup %454  ;;  %v345_v48 = vadd.f32 1.0, %v453_v40  ;;  %472 = vpow2.f32 %v316_v28  ;;  %v320_v50 = vmul.f32 1.442695, %v277_v45  ;;  %v254_v52 = vadd.f32 %v768_v54, %v228_v46 }
  0xb6   :  { %v457_v33 = vpop.eup %456  ;;  %v346_v53 = vadd.f32 1.0, %v455_v47  ;;  %474 = vpow2.f32 %v318_v35  ;;  %v322_v55 = vmul.f32 1.442695, %v278_v43  ;;  %v255_v17 = vadd.f32 %v768_v54, %v229_v14  ;;  %v178_v56 = vpop.permute.xlu0 %177 }
  0xb7   :  { %v180_v34 = vpop.permute.xlu1 %179  ;;  %v459_v57 = vpop.eup %458  ;;  %391 = vst.msk [vmem:[%s944_s3 + $0x30] sm:$0xff] %vm384_vm0, %v457_v33  ;;  %476 = vrcp.f32 %v345_v48  ;;  %v279_v49 = vsub.f32 0.0, %v254_v52  ;;  %v230_v51 = vadd.f32 %v178_v56, %v79_v42 }
  0xb8   :  { %v231_v58 = vadd.f32 %v180_v34, %v80_v24  ;;  %478 = vrcp.f32 %v346_v53  ;;  %v347_v59 = vadd.f32 1.0, %v459_v57  ;;  %v280_v18 = vsub.f32 0.0, %v255_v17 }
  0xb9   :  { %v461_v60 = vpop.eup %460  ;;  %480 = vpow2.f32 %v320_v50  ;;  %v324_v61 = vmul.f32 1.442695, %v279_v49  ;;  %v256_v62 = vadd.f32 %v768_v54, %v230_v51 }
  0xba   :  { %v257_v63 = vadd.f32 %v768_v54, %v231_v58  ;;  %v463_v0 = vpop.eup %462  ;;  %392 = vst.msk [vmem:[%s944_s3 + $0x38] sm:$0xff] %vm384_vm0, %v461_v60  ;;  %482 = vrcp.f32 %v347_v59  ;;  %v326_v37 = vmul.f32 1.442695, %v280_v18  ;;  %v182_v1 = vpop.permute.xlu0 %181 }
  0xbb   :  { %v465_v2 = vpop.eup %464  ;;  %393 = vst.msk [vmem:[%s944_s3 + $0x40] sm:$0xff] %vm384_vm0, %v463_v0  ;;  %484 = vpow2.f32 %v322_v55  ;;  %v281_v21 = vsub.f32 0.0, %v256_v62  ;;  %v232_v5 = vadd.f32 %v182_v1, %v81_v44 }
  0xbc   :  { %v282_v38 = vsub.f32 0.0, %v257_v63  ;;  %v467_v6 = vpop.eup %466  ;;  %v348_v7 = vadd.f32 1.0, %v465_v2  ;;  %486 = vpow2.f32 %v324_v61 }
  0xbd   :  { %v469_v8 = vpop.eup %468  ;;  %v349_v22 = vadd.f32 1.0, %v467_v6  ;;  %488 = vpow2.f32 %v326_v37  ;;  %v328_v3 = vmul.f32 1.442695, %v281_v21  ;;  %v258_v25 = vadd.f32 %v768_v54, %v232_v5 }
  0xbe   :  { %v330_v11 = vmul.f32 1.442695, %v282_v38  ;;  %v471_v4 = vpop.eup %470  ;;  %394 = vst.msk [vmem:[%s944_s3 + $0x48] sm:$0xff] %vm384_vm0, %v469_v8  ;;  %490 = vrcp.f32 %v348_v7 }
  0xbf   :  { %v473_v12 = vpop.eup %472  ;;  %395 = vst.msk [vmem:[%s944_s3 + $0x50] sm:$0xff] %vm384_vm0, %v471_v4  ;;  %492 = vrcp.f32 %v349_v22  ;;  %v283_v19 = vsub.f32 0.0, %v258_v25 }
  0xc0   :  { %v475_v15 = vpop.eup %474  ;;  %v350_v16 = vadd.f32 1.0, %v473_v12  ;;  %494 = vpow2.f32 %v328_v3 }
  0xc1   :  { %v477_v41 = vpop.eup %476  ;;  %v351_v26 = vadd.f32 1.0, %v475_v15  ;;  %496 = vpow2.f32 %v330_v11  ;;  %v332_v54 = vmul.f32 1.442695, %v283_v19 }
  0xc2   :  { %v479_v9 = vpop.eup %478  ;;  %396 = vst.msk [vmem:[%s944_s3 + $0x58] sm:$0xff] %vm384_vm0, %v477_v41  ;;  %498 = vrcp.f32 %v350_v16 }
  0xc3   :  { %v481_v20 = vpop.eup %480  ;;  %397 = vst.msk [vmem:[%s944_s3 + $0x60] sm:$0xff] %vm384_vm0, %v479_v9  ;;  %500 = vrcp.f32 %v351_v26 }
  0xc4   :  { %v483_v23 = vpop.eup %482  ;;  %v352_v42 = vadd.f32 1.0, %v481_v20  ;;  %502 = vpow2.f32 %v332_v54 }
  0xc5   :  { %v485_v24 = vpop.eup %484  ;;  %398 = vst.msk [vmem:[%s944_s3 + $0x68] sm:$0xff] %vm384_vm0, %v483_v23 }
  0xc6   :  { %v487_v10 = vpop.eup %486  ;;  %504 = vrcp.f32 %v352_v42  ;;  %v353_v27 = vadd.f32 1.0, %v485_v24 }
  0xc7   :  { %v489_v28 = vpop.eup %488  ;;  %v354_v29 = vadd.f32 1.0, %v487_v10 }
  0xc8   :  { %v491_v31 = vpop.eup %490  ;;  %506 = vrcp.f32 %v353_v27  ;;  %v355_v32 = vadd.f32 1.0, %v489_v28 }
  0xc9   :  { %v493_v35 = vpop.eup %492  ;;  %399 = vst.msk [vmem:[%s944_s3 + $0x70] sm:$0xff] %vm384_vm0, %v491_v31  ;;  %508 = vrcp.f32 %v354_v29 }
  0xca   :  { %v495_v36 = vpop.eup %494  ;;  %400 = vst.msk [vmem:[%s944_s3 + $0x78] sm:$0xff] %vm384_vm0, %v493_v35  ;;  %510 = vrcp.f32 %v355_v32 }
  0xcb   :  { %v497_v30 = vpop.eup %496  ;;  %v356_v13 = vadd.f32 1.0, %v495_v36 }
  0xcc   :  { %v499_v39 = vpop.eup %498  ;;  %v357_v45 = vadd.f32 1.0, %v497_v30 }
  0xcd   :  { %v501_v46 = vpop.eup %500  ;;  %401 = vst.msk [vmem:[%s944_s3 + $0x80] sm:$0xff] %vm384_vm0, %v499_v39  ;;  %512 = vrcp.f32 %v356_v13 }
  0xce   :  { %v503_v14 = vpop.eup %502  ;;  %402 = vst.msk [vmem:[%s944_s3 + $0x88] sm:$0xff] %vm384_vm0, %v501_v46  ;;  %514 = vrcp.f32 %v357_v45 }
  0xcf   :  { %v358_v40 = vadd.f32 1.0, %v503_v14 }
  0xd0   :  { %v505_v43 = vpop.eup %504 }
  0xd1   :  { %403 = vst.msk [vmem:[%s944_s3 + $0x90] sm:$0xff] %vm384_vm0, %v505_v43  ;;  %516 = vrcp.f32 %v358_v40 }
  0xd2   :  { %v507_v44 = vpop.eup %506 }
  0xd3   :  { %v509_v47 = vpop.eup %508  ;;  %404 = vst.msk [vmem:[%s944_s3 + $0x98] sm:$0xff] %vm384_vm0, %v507_v44 }
  0xd4   :  { %v511_v48 = vpop.eup %510  ;;  %405 = vst.msk [vmem:[%s944_s3 + $0xa0] sm:$0xff] %vm384_vm0, %v509_v47 }
  0xd5   :  { %406 = vst.msk [vmem:[%s944_s3 + $0xa8] sm:$0xff] %vm384_vm0, %v511_v48 }
  0xd7   :  { %v513_v50 = vpop.eup %512 }
  0xd8   :  { %v515_v52 = vpop.eup %514  ;;  %407 = vst.msk [vmem:[%s944_s3 + $0xb0] sm:$0xff] %vm384_vm0, %v513_v50 }
  0xd9   :  { %408 = vst.msk [vmem:[%s944_s3 + $0xb8] sm:$0xff] %vm384_vm0, %v515_v52 }
  0xdb   :  { %v517_v33 = vpop.eup %516 }
  0xdc   :  { %409 = vst.msk [vmem:[%s944_s3 + $0xc0] sm:$0xff] %vm384_vm0, %v517_v33 }
  0xdd   :  { %414 = vsyncpa [#allocation4], 1 }

</bundles_post_ra>
